<compile_context>
chip_gen: v5e
topology: v5e:2x2
jax: 0.10.0
libtpu: 0.0.40
codegen_flags: <defaults>
</compile_context>

<pallas_src>
import jax
import jax.numpy as jnp
from jax.experimental import pallas as pl
from jax.experimental.pallas import tpu as pltpu


def _copy_kernel(x_ref, o_ref):
    # Pure whole-tile copy: no VPU work, no per-row slicing, no dtype casts.
    o_ref[...] = x_ref[...]


# Candidate lane-dense widths (largest first); all multiples of 128.
_LANE_WIDTHS = (4096, 2048, 1024, 512, 256, 128)

# Per-buffer tile budget. Input + output are each double-buffered, so peak
# VMEM ~= 4 * tile_bytes; 2 MiB per tile => ~8 MiB, well under the 32 MiB
# scoped default on every generation (including v7x's smaller VMEM).
_TILE_BYTES = 2 * 1024 * 1024


def status_layer(x: jax.Array, message: str = "") -> jax.Array:
    """Pallas equivalent of StatusLayer.forward: print status, return x."""
    # Host-side status print (shape is static at trace time).
    # TODO(synk): per-call runtime printing (PyTorch semantics under jit)
    # would need jax.debug.print; kept as a trace-time host print here.
    print(message, tuple(x.shape))

    total = int(x.size)
    itemsize = jnp.dtype(x.dtype).itemsize

    # Pick a lane-dense width that divides the flattened size; prefer one that
    # also gives a sublane-dense row count (multiple of 8).
    divisible = [w for w in _LANE_WIDTHS if total % w == 0]
    if not divisible:
        # Fallback: single full-array block (legal: block dims == array dims).
        return pl.pallas_call(
            _copy_kernel,
            out_shape=jax.ShapeDtypeStruct(x.shape, x.dtype),
            in_specs=[pl.BlockSpec(x.shape, lambda: (0,) * x.ndim)],
            out_specs=pl.BlockSpec(x.shape, lambda: (0,) * x.ndim),
            input_output_aliases={0: 0},
        )(x)

    width = next((w for w in divisible if (total // w) % 8 == 0), divisible[0])
    rows = total // width
    x2d = x.reshape(rows, width)

    # Rows per tile: capped by the VMEM budget; a multiple of 32 sublanes so
    # packed dtypes (bf16/int8) keep aligned sublane tiles, or the full rows.
    max_rows = max(1, _TILE_BYTES // (width * itemsize))
    if rows <= max_rows:
        tile_rows = rows
    else:
        tile_rows = max(32, (max_rows // 32) * 32)

    grid = (pl.cdiv(rows, tile_rows),)

    y2d = pl.pallas_call(
        _copy_kernel,
        out_shape=jax.ShapeDtypeStruct((rows, width), x.dtype),
        grid=grid,
        in_specs=[pl.BlockSpec((tile_rows, width), lambda i: (i, 0))],
        out_specs=pl.BlockSpec((tile_rows, width), lambda i: (i, 0)),
        # Output aliases input: no extra HBM output buffer is materialized.
        input_output_aliases={0: 0},
        compiler_params=pltpu.CompilerParams(
            dimension_semantics=("parallel",),
        ),
    )(x2d)

    return y2d.reshape(x.shape)


if __name__ == "__main__":
    key = jax.random.PRNGKey(0)
    # Small NCHW input consistent with a conv-style model: batch=2, channels=4,
    # spatial=16x16.
    x = jax.random.normal(key, (2, 4, 16, 16), dtype=jnp.float32)

    y = status_layer(x, message="status:")
    y = jax.block_until_ready(y)

    # Verify identity semantics.
    assert y.shape == x.shape and y.dtype == x.dtype
    assert bool(jnp.all(y == x))

    print("KERNEL_OK")
</pallas_src>

<mosaic_0001>
module attributes {stable_mosaic.version = 11 : i64} {
  func.func @_copy_kernel(%arg0: i32, %arg1: memref<8x256xf32, #tpu.memory_space<vmem>>, %arg2: memref<8x256xf32, #tpu.memory_space<vmem>>) attributes {dimension_semantics = [#tpu.dimension_semantics<parallel>], iteration_bounds = array<i64: 1>, scalar_prefetch = 0 : i64, scratch_operands = 0 : i64, tpu.core_type = #tpu.core_type<tc>, window_params = [{transform_indices = @transform_0, window_bounds = array<i64: 8, 256>}, {transform_indices = @transform_1, window_bounds = array<i64: 8, 256>}]} {
    %c0 = arith.constant 0 : index
    %c0_0 = arith.constant 0 : index
    %0 = vector.load %arg1[%c0, %c0_0] : memref<8x256xf32, #tpu.memory_space<vmem>>, vector<8x256xf32>
    %c0_1 = arith.constant 0 : index
    %c0_2 = arith.constant 0 : index
    %1 = vector.load %arg2[%c0_1, %c0_2] : memref<8x256xf32, #tpu.memory_space<vmem>>, vector<8x256xf32>
    tpu.vector_store %arg2[%c0_1, %c0_2], %0 {strides = array<i32>} : memref<8x256xf32, #tpu.memory_space<vmem>>, vector<8x256xf32>,
    return
  }
  func.func @transform_0(%arg0: i32) -> (i32, i32) {
    %c0_i32 = arith.constant 0 : i32
    %c0_i32_0 = arith.constant 0 : i32
    return %arg0, %c0_i32 : i32, i32
  }
  func.func @transform_1(%arg0: i32) -> (i32, i32) {
    %c0_i32 = arith.constant 0 : i32
    %c0_i32_0 = arith.constant 0 : i32
    return %arg0, %c0_i32 : i32, i32
  }
}

</mosaic_0001>

<bundles_post_ra>
// kernel: tpu_custom_call.1
= control target key start
LH: loop header
LB: loop body
LE: loop exit
PB: predicated region body
PF: predicated region fallthrough
CT: control target
= control target key end

     0   :  { %6 = vsyncpa [#allocation3], 0  ;;  %s116_s0 = inlined_call_operand.hbm [shape: f32[8,256], index: 0, kind: input, shape index: {}, may-alias: {0,1}]   ;;  %s117_s1 = inlined_call_operand.hbm [shape: f32[8,256], index: 1, kind: output, shape index: {}, may-alias: {0,1}]  }
   0x1   :  { %7 = vsyncpa [#allocation4], 0  ;;  %s13_s8 = sshll.u32 %s116_s0, 4  ;;  %s98_s9 = smov [#allocation2]   ;;  %s14_s8 = int_to_ptr.hbm [resolvable:$true] %s13_s8 }
   0x2   :  { %s15_s10 = sshll.u32 %s98_s9, 4  ;;  %s16_s10 = int_to_ptr.vmem [resolvable:$true] %s15_s10 }
   0x3   :  { %18 = dma.hbm_to_vmem [thread:$0]  %s14_s8, 256, %s16_s10, [#allocation3]  }
   0x4   :  { %94 = dma.done.wait [#allocation3], 256  }
   0x5   :  { %95 = vsyncadd [#allocation3], 4294967040  ;;  %s99_s11 = smov [#allocation5]   ;;  %s34_s15 = sshll.u32 %s117_s1, 4  ;;  %v23_v0 = vld [vmem:[#allocation2] sm:$0xff]  ;;  %v24_v1 = vld [vmem:[#allocation2 + $0x8] sm:$0xff]  ;;  %s35_s15 = int_to_ptr.hbm [resolvable:$true] %s34_s15 }
   0x6   :  { %s32_s12 = sshll.u32 %s99_s11, 4  ;;  %25 = vst [vmem:[#allocation5] sm:$0xff] %v23_v0  ;;  %s33_s12 = int_to_ptr.vmem [resolvable:$true] %s32_s12 }
   0x7   :  { %26 = vst [vmem:[#allocation5 + $0x8] sm:$0xff] %v24_v1 }
   0x8   :  { %37 = dma.vmem_to_hbm [thread:$0]  %s33_s12, 256, %s35_s15, [#allocation4]  }
   0x9   :  { %96 = dma.done.wait [#allocation4], 256  }
   0xa   :  { %97 = vsyncadd [#allocation4], 4294967040 }
   0xb   :  { %42 = vsyncpa [#allocation3], 1 }
   0xc   :  { %43 = vsyncpa [#allocation4], 1 }

</bundles_post_ra>
